<compile_context>
chip_gen: v6e
topology: v6e:2x2x1
jax: 0.10.0
libtpu: 0.0.40
codegen_flags: <defaults>
</compile_context>

<pallas_src>
import jax
import jax.numpy as jnp
from jax.experimental import pallas as pl
from jax.experimental.pallas import tpu as pltpu


# ----------------------------- Pallas kernels -----------------------------

def _fc_ln_relu_kernel(x_ref, w_ref, b_ref, g_ref, beta_ref, o_ref):
    """y = ReLU(LayerNorm(x @ W + b)); single block, f32 accumulate + f32 epilogue."""
    y = jnp.dot(x_ref[...], w_ref[...],
                preferred_element_type=jnp.float32) + b_ref[...]      # (B, E) f32
    mean = jnp.mean(y, axis=-1, keepdims=True)
    var = jnp.mean((y - mean) ** 2, axis=-1, keepdims=True)          # biased var (torch LN)
    yhat = (y - mean) * jax.lax.rsqrt(var + 1e-5)
    y = yhat * g_ref[...] + beta_ref[...]
    o_ref[...] = jnp.maximum(y, 0.0).astype(o_ref.dtype)   # ReLU; dropout = eval identity


def _conv1x1_relu_kernel(x_ref, w_ref, b_ref, o_ref):
    """Lane-dense 1x1 conv: y = ReLU(W(E,C) @ x(C, B*HW) + b), single MXU pass."""
    # x_ref: (C, N) bf16 ; w_ref: (E, C) bf16 ; b_ref: (E, 1) f32 ; o_ref: (E, N) f32
    y = jnp.dot(w_ref[...], x_ref[...],
                preferred_element_type=jnp.float32) + b_ref[...]      # (E, N) f32
    o_ref[...] = jnp.maximum(y, 0.0).astype(o_ref.dtype)


# ------------------------------ wrappers ----------------------------------

def fc_layernorm_relu(x, w, b, gamma, beta):
    """Baseline head: (B, F) -> (B, E). Single-block kernel (operands ~140 KiB)."""
    B, F = x.shape
    E = w.shape[1]
    return pl.pallas_call(
        _fc_ln_relu_kernel,
        out_shape=jax.ShapeDtypeStruct((B, E), jnp.float32),
        grid_spec=pltpu.PrefetchScalarGridSpec(
            num_scalar_prefetch=0,
            grid=(1,),
            in_specs=[
                pl.BlockSpec((B, F), lambda i: (0, 0)),
                pl.BlockSpec((F, E), lambda i: (0, 0)),
                pl.BlockSpec((1, E), lambda i: (0, 0)),
                pl.BlockSpec((1, E), lambda i: (0, 0)),
                pl.BlockSpec((1, E), lambda i: (0, 0)),
            ],
            out_specs=pl.BlockSpec((B, E), lambda i: (0, 0)),
        ),
        compiler_params=pltpu.CompilerParams(dimension_semantics=("arbitrary",)),
    )(x, w, b.reshape(1, E), gamma.reshape(1, E), beta.reshape(1, E))


def conv1x1_relu(x_nchw, w_ec, b):
    """Attention head: NCHW (B, C, H, W) -> NCHW (B, E, H, W).

    Single-block, lane-dense formulation: x is relayouted once (tiny ~200 KiB
    transpose) to (C, B*HW) so the kernel does one (E,C)@(C,B*HW) MXU matmul
    with the full channel reduction in-block, a dense-lane bias/ReLU epilogue,
    and a single dense output store. No grid steps, no scratch accumulator.
    """
    B, C, H, W = x_nchw.shape
    E = w_ec.shape[0]
    N = B * H * W
    # (B,C,H,W) -> (C,B,H,W) -> (C, B*HW): puts the matmul N dim on the lanes.
    x2d = jnp.transpose(x_nchw, (1, 0, 2, 3)).reshape(C, N)
    y = pl.pallas_call(
        _conv1x1_relu_kernel,
        out_shape=jax.ShapeDtypeStruct((E, N), jnp.float32),
        grid_spec=pltpu.PrefetchScalarGridSpec(
            num_scalar_prefetch=0,
            grid=(1,),
            in_specs=[
                pl.BlockSpec((C, N), lambda i: (0, 0)),
                pl.BlockSpec((E, C), lambda i: (0, 0)),
                pl.BlockSpec((E, 1), lambda i: (0, 0)),
            ],
            out_specs=pl.BlockSpec((E, N), lambda i: (0, 0)),
        ),
        compiler_params=pltpu.CompilerParams(dimension_semantics=("arbitrary",)),
    )(x2d, w_ec, b.reshape(E, 1))
    # (E, B*HW) -> (E, B, H, W) -> (B, E, H, W): tiny (~25 KiB) wrapper relayout.
    return jnp.transpose(y.reshape(E, B, H, W), (1, 0, 2, 3))


# ----------------------------- references ---------------------------------

def _ref_baseline(x, w, b, gamma, beta, eps=1e-5):
    y = x.astype(jnp.float32) @ w.astype(jnp.float32) + b
    mean = jnp.mean(y, axis=-1, keepdims=True)
    var = jnp.mean((y - mean) ** 2, axis=-1, keepdims=True)
    y = (y - mean) / jnp.sqrt(var + eps) * gamma + beta
    return jnp.maximum(y, 0.0)


def _ref_attention(x_nchw, w_ec, b):
    y = jnp.einsum('ec,bchw->behw',
                   w_ec.astype(jnp.float32), x_nchw.astype(jnp.float32))
    y = y + b[None, :, None, None]
    return jnp.maximum(y, 0.0)


# -------------------------------- main -------------------------------------

if __name__ == "__main__":
    key = jax.random.PRNGKey(0)
    k_feat, k_sp, k_fcw, k_fcb, k_cw, k_cb = jax.random.split(key, 6)

    B = 2
    F = 2048           # resnet50 feature size (fc.in_features / spatial channels)
    E = 32             # embed_size (small)
    H = W = 7          # spatial map for 224x224 input through resnet50 (attention=True)

    # TODO(synk): resnet(images) backbone not reimplemented; synthetic features below.
    # Features / weights streamed as bf16 (MXU-native); biases & LN params stay f32.
    feats = jax.random.normal(k_feat, (B, F), jnp.float32).astype(jnp.bfloat16)
    feats_sp = jax.random.normal(k_sp, (B, F, H, W), jnp.float32).astype(jnp.bfloat16)

    # fc weight stored pre-transposed (F, E) once (torch nn.Linear keeps (E, F)).
    fc_w = (0.02 * jax.random.normal(k_fcw, (F, E), jnp.float32)).astype(jnp.bfloat16)
    fc_b = 0.01 * jax.random.normal(k_fcb, (E,), jnp.float32)
    ln_gamma = jnp.ones((E,), jnp.float32)
    ln_beta = jnp.zeros((E,), jnp.float32)
    # conv weight in native torch layout (E, F, 1, 1) squeezed -> (E, F); no transpose needed.
    conv_w = (0.02 * jax.random.normal(k_cw, (E, F), jnp.float32)).astype(jnp.bfloat16)
    conv_b = 0.01 * jax.random.normal(k_cb, (E,), jnp.float32)

    # Baseline head (attention=False): (B, E)
    out_base = fc_layernorm_relu(feats, fc_w, fc_b, ln_gamma, ln_beta)
    # Attention head (attention=True): (B, E, H, W)
    out_attn = conv1x1_relu(feats_sp, conv_w, conv_b)

    jax.block_until_ready((out_base, out_attn))

    assert out_base.shape == (B, E) and out_base.dtype == jnp.float32
    assert out_attn.shape == (B, E, H, W) and out_attn.dtype == jnp.float32

    ref_base = _ref_baseline(feats, fc_w, fc_b, ln_gamma, ln_beta)
    ref_attn = _ref_attention(feats_sp, conv_w, conv_b)
    # bf16-streamed operands, f32 accumulate -> relax tolerance vs the bf16-input reference.
    assert jnp.allclose(out_base, ref_base, atol=2e-2, rtol=2e-2)
    assert jnp.allclose(out_attn, ref_attn, atol=2e-2, rtol=2e-2)

    print("KERNEL_OK")
</pallas_src>

<mosaic_0001>
module attributes {stable_mosaic.version = 11 : i64} {
  func.func @_fc_ln_relu_kernel(%arg0: i32, %arg1: memref<2x2048xbf16, #tpu.memory_space<vmem>>, %arg2: memref<2048x32xbf16, #tpu.memory_space<vmem>>, %arg3: memref<1x32xf32, #tpu.memory_space<vmem>>, %arg4: memref<1x32xf32, #tpu.memory_space<vmem>>, %arg5: memref<1x32xf32, #tpu.memory_space<vmem>>, %arg6: memref<2x32xf32, #tpu.memory_space<vmem>>) attributes {dimension_semantics = [#tpu.dimension_semantics<arbitrary>], iteration_bounds = array<i64: 1>, scalar_prefetch = 0 : i64, scratch_operands = 0 : i64, tpu.core_type = #tpu.core_type<tc>, window_params = [{pipeline_mode = #tpu.pipeline_mode<synchronous>, transform_indices = @transform_0, window_bounds = array<i64: 2, 2048>}, {pipeline_mode = #tpu.pipeline_mode<synchronous>, transform_indices = @transform_1, window_bounds = array<i64: 2048, 32>}, {pipeline_mode = #tpu.pipeline_mode<synchronous>, transform_indices = @transform_2, window_bounds = array<i64: 1, 32>}, {pipeline_mode = #tpu.pipeline_mode<synchronous>, transform_indices = @transform_3, window_bounds = array<i64: 1, 32>}, {pipeline_mode = #tpu.pipeline_mode<synchronous>, transform_indices = @transform_4, window_bounds = array<i64: 1, 32>}, {pipeline_mode = #tpu.pipeline_mode<synchronous>, transform_indices = @transform_5, window_bounds = array<i64: 2, 32>}]} {
    %c0 = arith.constant 0 : index
    %c0_0 = arith.constant 0 : index
    %0 = vector.load %arg1[%c0, %c0_0] : memref<2x2048xbf16, #tpu.memory_space<vmem>>, vector<2x2048xbf16>
    %c0_1 = arith.constant 0 : index
    %c0_2 = arith.constant 0 : index
    %1 = vector.load %arg2[%c0_1, %c0_2] : memref<2048x32xbf16, #tpu.memory_space<vmem>>, vector<2048x32xbf16>
    %cst = arith.constant dense<0.000000e+00> : vector<2x32xf32>
    %2 = tpu.matmul %0, %1, %cst {dimension_numbers = #tpu.dot_dimension_numbers<[1], [0], [0], [1], [0, 0, 1, 1], [], []>} : vector<2x2048xbf16>, vector<2048x32xbf16>, vector<2x32xf32> -> vector<2x32xf32>
    %c0_3 = arith.constant 0 : index
    %c0_4 = arith.constant 0 : index
    %3 = vector.load %arg3[%c0_3, %c0_4] : memref<1x32xf32, #tpu.memory_space<vmem>>, vector<1x32xf32>
    %4 = vector.broadcast %3 : vector<1x32xf32> to vector<2x32xf32>
    %5 = arith.addf %2, %4 : vector<2x32xf32>
    %cst_5 = arith.constant dense<0.000000e+00> : vector<2xf32>
    %6 = vector.multi_reduction <add>, %5, %cst_5 [1] : vector<2x32xf32> to vector<2xf32>
    %7 = vector.shape_cast %6 : vector<2xf32> to vector<2x1xf32>
    %cst_6 = arith.constant 3.200000e+01 : f32
    %8 = vector.broadcast %cst_6 : f32 to vector<2x1xf32>
    %9 = arith.divf %7, %8 : vector<2x1xf32>
    %10 = vector.broadcast %9 : vector<2x1xf32> to vector<2x32xf32>
    %11 = arith.subf %5, %10 : vector<2x32xf32>
    %12 = arith.mulf %11, %11 : vector<2x32xf32>
    %cst_7 = arith.constant dense<0.000000e+00> : vector<2xf32>
    %13 = vector.multi_reduction <add>, %12, %cst_7 [1] : vector<2x32xf32> to vector<2xf32>
    %14 = vector.shape_cast %13 : vector<2xf32> to vector<2x1xf32>
    %cst_8 = arith.constant 3.200000e+01 : f32
    %15 = vector.broadcast %cst_8 : f32 to vector<2x1xf32>
    %16 = arith.divf %14, %15 : vector<2x1xf32>
    %17 = vector.broadcast %9 : vector<2x1xf32> to vector<2x32xf32>
    %18 = arith.subf %5, %17 : vector<2x32xf32>
    %cst_9 = arith.constant 9.99999974E-6 : f32
    %19 = vector.broadcast %cst_9 : f32 to vector<2x1xf32>
    %20 = arith.addf %16, %19 : vector<2x1xf32>
    %21 = math.rsqrt %20 : vector<2x1xf32>
    %22 = vector.broadcast %21 : vector<2x1xf32> to vector<2x32xf32>
    %23 = arith.mulf %18, %22 : vector<2x32xf32>
    %c0_10 = arith.constant 0 : index
    %c0_11 = arith.constant 0 : index
    %24 = vector.load %arg4[%c0_10, %c0_11] : memref<1x32xf32, #tpu.memory_space<vmem>>, vector<1x32xf32>
    %25 = vector.broadcast %24 : vector<1x32xf32> to vector<2x32xf32>
    %26 = arith.mulf %23, %25 : vector<2x32xf32>
    %c0_12 = arith.constant 0 : index
    %c0_13 = arith.constant 0 : index
    %27 = vector.load %arg5[%c0_12, %c0_13] : memref<1x32xf32, #tpu.memory_space<vmem>>, vector<1x32xf32>
    %28 = vector.broadcast %27 : vector<1x32xf32> to vector<2x32xf32>
    %29 = arith.addf %26, %28 : vector<2x32xf32>
    %cst_14 = arith.constant 0.000000e+00 : f32
    %30 = vector.broadcast %cst_14 : f32 to vector<2x32xf32>
    %31 = arith.maximumf %29, %30 : vector<2x32xf32>
    %c0_15 = arith.constant 0 : index
    %c0_16 = arith.constant 0 : index
    %32 = vector.load %arg6[%c0_15, %c0_16] : memref<2x32xf32, #tpu.memory_space<vmem>>, vector<2x32xf32>
    tpu.vector_store %arg6[%c0_15, %c0_16], %31 {strides = array<i32>} : memref<2x32xf32, #tpu.memory_space<vmem>>, vector<2x32xf32>,
    return
  }
  func.func @transform_0(%arg0: i32) -> (i32, i32) {
    %c0_i32 = arith.constant 0 : i32
    %c0_i32_0 = arith.constant 0 : i32
    %c0_i32_1 = arith.constant 0 : i32
    return %c0_i32, %c0_i32_0 : i32, i32
  }
  func.func @transform_1(%arg0: i32) -> (i32, i32) {
    %c0_i32 = arith.constant 0 : i32
    %c0_i32_0 = arith.constant 0 : i32
    %c0_i32_1 = arith.constant 0 : i32
    return %c0_i32, %c0_i32_0 : i32, i32
  }
  func.func @transform_2(%arg0: i32) -> (i32, i32) {
    %c0_i32 = arith.constant 0 : i32
    %c0_i32_0 = arith.constant 0 : i32
    %c0_i32_1 = arith.constant 0 : i32
    return %c0_i32, %c0_i32_0 : i32, i32
  }
  func.func @transform_3(%arg0: i32) -> (i32, i32) {
    %c0_i32 = arith.constant 0 : i32
    %c0_i32_0 = arith.constant 0 : i32
    %c0_i32_1 = arith.constant 0 : i32
    return %c0_i32, %c0_i32_0 : i32, i32
  }
  func.func @transform_4(%arg0: i32) -> (i32, i32) {
    %c0_i32 = arith.constant 0 : i32
    %c0_i32_0 = arith.constant 0 : i32
    %c0_i32_1 = arith.constant 0 : i32
    return %c0_i32, %c0_i32_0 : i32, i32
  }
  func.func @transform_5(%arg0: i32) -> (i32, i32) {
    %c0_i32 = arith.constant 0 : i32
    %c0_i32_0 = arith.constant 0 : i32
    %c0_i32_1 = arith.constant 0 : i32
    return %c0_i32, %c0_i32_0 : i32, i32
  }
}

</mosaic_0001>

<bundles_post_ra>
// kernel: tpu_custom_call.1
= control target key start
LH: loop header
LB: loop body
LE: loop exit
PB: predicated region body
PF: predicated region fallthrough
CT: control target
= control target key end

     0   :  { %v293_v28 = vlaneseq  ;;  %v2001_v36 = vmov 1966171168   ;;  %s2462_s0 = inlined_call_operand.vmem [shape: bf16[2,2048], index: 0, kind: input, shape index: {}]   ;;  %s2463_s1 = inlined_call_operand.vmem [shape: bf16[2048,32], index: 1, kind: input, shape index: {}]   ;;  %s2464_s2 = inlined_call_operand.vmem [shape: f32[1,32], index: 2, kind: input, shape index: {}]   ;;  %s2465_s3 = inlined_call_operand.vmem [shape: f32[1,32], index: 3, kind: input, shape index: {}]   ;;  %s2466_s4 = inlined_call_operand.vmem [shape: f32[1,32], index: 4, kind: input, shape index: {}]   ;;  %s2467_s5 = inlined_call_operand.hbm [shape: f32[2,32], index: 5, kind: output, shape index: {}]  }
   0x1   :  { %v1847_v0 = vld [vmem:[%s2463_s1 + $0x78] sm:$0xff]   ;;  %v1851_v4 = vld [vmem:[%s2463_s1 + $0x70] sm:$0xff]   ;;  %v1855_v8 = vld [vmem:[%s2463_s1 + $0x68] sm:$0xff]   ;;  %v291_v37 = vunpack.c.l.s4 %v2001_v36 }
   0x2   :  { %v1848_v1 = vld [vmem:[%s2463_s1 + $0xf8] sm:$0xff]   ;;  %1669 = vmatprep.subr.bf16.mxu0 %v1847_v0  ;;  %v1852_v5 = vld [vmem:[%s2463_s1 + $0xf0] sm:$0xff]   ;;  %v1856_v9 = vld [vmem:[%s2463_s1 + $0xe8] sm:$0xff]   ;;  %v294_v33 = vshrl.u32 %v293_v28, 7 }
   0x3   :  { %v1849_v2 = vld [vmem:[%s2463_s1 + $0x38] sm:$0xff]   ;;  %1691 = vmatprep.subr.bf16.mxu1 %v1848_v1  ;;  %v1853_v6 = vld [vmem:[%s2463_s1 + $0x30] sm:$0xff]   ;;  %v1857_v10 = vld [vmem:[%s2463_s1 + $0x28] sm:$0xff]   ;;  %v292_v40 = vunpack.c.0.s8 %v291_v37 }
   0x4   :  { %v1850_v3 = vld [vmem:[%s2463_s1 + $0xb8] sm:$0xff]   ;;  %1670 = vmatpush3.bf16.msra.mxu0 %v1849_v2  ;;  %v1854_v7 = vld [vmem:[%s2463_s1 + $0xb0] sm:$0xff]   ;;  %v1858_v11 = vld [vmem:[%s2463_s1 + $0xa8] sm:$0xff]  }
   0x5   :  { %1692 = vmatpush3.bf16.msra.mxu1 %v1850_v3  ;;  %1671 = vmatprep.subr.bf16.mxu0 %v1851_v4  ;;  %v1859_v12 = vld [vmem:[%s2463_s1 + $0x60] sm:$0xff]   ;;  %v1863_v16 = vld [vmem:[%s2463_s1 + $0x58] sm:$0xff]   ;;  %v1867_v20 = vld [vmem:[%s2463_s1 + $0x50] sm:$0xff]   ;;  %v2138_v41 = vsub.s32 %v292_v40, %v294_v33 }
   0x6   :  { %1693 = vmatprep.subr.bf16.mxu1 %v1852_v5  ;;  %v1860_v13 = vld [vmem:[%s2463_s1 + $0xe0] sm:$0xff]   ;;  %v1864_v17 = vld [vmem:[%s2463_s1 + $0xd8] sm:$0xff]   ;;  %v1868_v21 = vld [vmem:[%s2463_s1 + $0xd0] sm:$0xff]  }
   0x7   :  { %v1861_v14 = vld [vmem:[%s2463_s1 + $0x20] sm:$0xff]   ;;  %v1865_v18 = vld [vmem:[%s2463_s1 + $0x18] sm:$0xff]   ;;  %v1869_v22 = vld [vmem:[%s2463_s1 + $0x10] sm:$0xff]  }
   0x8   :  { %1672 = vmatpush3.bf16.msra.mxu0 %v1853_v6  ;;  %v1862_v15 = vld [vmem:[%s2463_s1 + $0xa0] sm:$0xff]   ;;  %v1866_v19 = vld [vmem:[%s2463_s1 + $0x98] sm:$0xff]   ;;  %v1870_v23 = vld [vmem:[%s2463_s1 + $0x90] sm:$0xff]  }
   0x9   :  { %1694 = vmatpush3.bf16.msra.mxu1 %v1854_v7  ;;  %1673 = vmatprep.subr.bf16.mxu0 %v1855_v8  ;;  %v1871_v24 = vld [vmem:[%s2463_s1 + $0x48] sm:$0xff]   ;;  %v1875_v29 = vld [vmem:[%s2463_s1 + $0x40] sm:$0xff]   ;;  %v1880_v35 = vld [vmem:[%s2463_s1 + $0x178] sm:$0xff]  }
   0xa   :  { %1695 = vmatprep.subr.bf16.mxu1 %v1856_v9  ;;  %v1872_v25 = vld [vmem:[%s2463_s1 + $0xc8] sm:$0xff]   ;;  %v1876_v30 = vld [vmem:[%s2463_s1 + $0xc0] sm:$0xff]   ;;  %v1881_v38 = vld [vmem:[%s2463_s1 + $0x1f8] sm:$0xff]  }
   0xb   :  { %v1873_v26 = vld [vmem:[%s2463_s1 + $0x8] sm:$0xff]   ;;  %v1877_v31 = vld [vmem:[%s2463_s1] sm:$0xff]   ;;  %v1882_v48 = vld [vmem:[%s2463_s1 + $0x138] sm:$0xff]  }
   0xc   :  { %1674 = vmatpush3.bf16.msra.mxu0 %v1857_v10  ;;  %v1874_v27 = vld [vmem:[%s2463_s1 + $0x88] sm:$0xff]   ;;  %v1878_v32 = vld [vmem:[%s2463_s1 + $0x80] sm:$0xff]   ;;  %v1884_v51 = vld [vmem:[%s2463_s1 + $0x170] sm:$0xff]  }
   0xd   :  { %1696 = vmatpush3.bf16.msra.mxu1 %v1858_v11  ;;  %1675 = vmatprep.subr.bf16.mxu0 %v1859_v12  ;;  %v22_v34 = vld [vmem:[%s2462_s0] sm:$0xff]  ;;  %v1883_v53 = vld [vmem:[%s2463_s1 + $0x1b8] sm:$0xff]   ;;  %v1885_v54 = vld [vmem:[%s2463_s1 + $0x1f0] sm:$0xff]  }
   0xe   :  { %1697 = vmatprep.subr.bf16.mxu1 %v1860_v13  ;;  %v289_v39 = vcombine.high %v22_v34, %v22_v34  ;;  %v296_v42 = vrot.slane %v22_v34, %v2138_v41  ;;  %v1886_v56 = vld [vmem:[%s2463_s1 + $0x130] sm:$0xff]   ;;  %v1888_v57 = vld [vmem:[%s2463_s1 + $0x168] sm:$0xff]   ;;  %v1892_v61 = vld [vmem:[%s2463_s1 + $0x160] sm:$0xff]  }
   0xf   :  { %v1887_v58 = vld [vmem:[%s2463_s1 + $0x1b0] sm:$0xff]   ;;  %v1889_v59 = vld [vmem:[%s2463_s1 + $0x1e8] sm:$0xff]   ;;  %v1893_v63 = vld [vmem:[%s2463_s1 + $0x1e0] sm:$0xff]  }
  0x10   :  { %1676 = vmatpush3.bf16.msra.mxu0 %v1861_v14  ;;  %v2142_v43 = vrot.slane %v289_v39, %v2138_v41  ;;  %v304_v44 = vcombine.high %v296_v42, %v296_v42  ;;  %v312_v45 = vrot.slane %v296_v42, %v2138_v41  ;;  %v1890_v60 = vld [vmem:[%s2463_s1 + $0x128] sm:$0xff]   ;;  %v1894_v0 = vld [vmem:[%s2463_s1 + $0x120] sm:$0xff]   ;;  %v1896_v1 = vld [vmem:[%s2463_s1 + $0x158] sm:$0xff]  }
  0x11   :  { %1698 = vmatpush3.bf16.msra.mxu1 %v1862_v15  ;;  %1677 = vmatprep.subr.bf16.mxu0 %v1863_v16  ;;  %v1891_v62 = vld [vmem:[%s2463_s1 + $0x1a8] sm:$0xff]   ;;  %v1895_v2 = vld [vmem:[%s2463_s1 + $0x1a0] sm:$0xff]   ;;  %v1897_v3 = vld [vmem:[%s2463_s1 + $0x1d8] sm:$0xff]  }
  0x12   :  { %1699 = vmatprep.subr.bf16.mxu1 %v1864_v17  ;;  %v305_v46 = vcombine.high %v2142_v43, %v2142_v43  ;;  %v326_v47 = vrot.slane %v304_v44, %v2138_v41  ;;  %v334_v50 = vcombine.high %v312_v45, %v312_v45  ;;  %v1898_v4 = vld [vmem:[%s2463_s1 + $0x118] sm:$0xff]   ;;  %v1900_v5 = vld [vmem:[%s2463_s1 + $0x150] sm:$0xff]   ;;  %v1904_v9 = vld [vmem:[%s2463_s1 + $0x148] sm:$0xff]   ;;  %v319_v17 = vrot.slane %v2142_v43, %v2138_v41 }
  0x13   :  { %v1899_v6 = vld [vmem:[%s2463_s1 + $0x198] sm:$0xff]   ;;  %v1901_v7 = vld [vmem:[%s2463_s1 + $0x1d0] sm:$0xff]   ;;  %v1905_v11 = vld [vmem:[%s2463_s1 + $0x1c8] sm:$0xff]  }
  0x14   :  { %1678 = vmatpush3.bf16.msra.mxu0 %v1865_v18  ;;  %v333_v49 = vrot.slane %v305_v46, %v2138_v41  ;;  %1203 = vmatprep.mubr.bf16.mxu0 %v326_v47  ;;  %v336_v52 = vcombine.high %v326_v47, %v326_v47  ;;  %v1902_v8 = vld [vmem:[%s2463_s1 + $0x110] sm:$0xff]   ;;  %v1906_v12 = vld [vmem:[%s2463_s1 + $0x108] sm:$0xff]   ;;  %v1908_v13 = vld [vmem:[%s2463_s1 + $0x140] sm:$0xff]  }
  0x15   :  { %1700 = vmatpush3.bf16.msra.mxu1 %v1866_v19  ;;  %1679 = vmatprep.subr.bf16.mxu0 %v1867_v20  ;;  %v1903_v10 = vld [vmem:[%s2463_s1 + $0x190] sm:$0xff]   ;;  %v1907_v14 = vld [vmem:[%s2463_s1 + $0x188] sm:$0xff]   ;;  %v1909_v15 = vld [vmem:[%s2463_s1 + $0x1c0] sm:$0xff]  }
  0x16   :  { %1701 = vmatprep.subr.bf16.mxu1 %v1868_v21  ;;  %v337_v55 = vcombine.high %v333_v49, %v333_v49  ;;  %1243 = vmatprep.mubr.bf16.mxu1 %v336_v52  ;;  %v1910_v16 = vld [vmem:[%s2463_s1 + $0x100] sm:$0xff]   ;;  %v1912_v18 = vld [vmem:[%s2463_s1 + $0x278] sm:$0xff]   ;;  %v1919_v28 = vld [vmem:[%s2463_s1 + $0x2b0] sm:$0xff]  }
  0x17   :  { %v1911_v19 = vld [vmem:[%s2463_s1 + $0x180] sm:$0xff]   ;;  %v1913_v20 = vld [vmem:[%s2463_s1 + $0x2f8] sm:$0xff]   ;;  %v1932_v39 = vld [vmem:[%s2463_s1 + $0x250] sm:$0xff]  }
  0x18   :  { %1680 = vmatpush3.bf16.msra.mxu0 %v1869_v22  ;;  %v1914_v21 = vld [vmem:[%s2463_s1 + $0x238] sm:$0xff]   ;;  %v335_v22 = vcombine.high %v319_v17, %v319_v17  ;;  %v1925_v33 = vld [vmem:[%s2463_s1 + $0x2e0] sm:$0xff]   ;;  %v1933_v42 = vld [vmem:[%s2463_s1 + $0x2d0] sm:$0xff]  }
  0x19   :  { %1702 = vmatpush3.bf16.msra.mxu1 %v1870_v23  ;;  %1681 = vmatprep.subr.bf16.mxu0 %v1871_v24  ;;  %v1916_v23 = vld [vmem:[%s2463_s1 + $0x270] sm:$0xff]   ;;  %v1915_v24 = vld [vmem:[%s2463_s1 + $0x2b8] sm:$0xff]   ;;  %v1926_v34 = vld [vmem:[%s2463_s1 + $0x220] sm:$0xff]  }
  0x1a   :  { %1703 = vmatprep.subr.bf16.mxu1 %v1872_v25  ;;  %v1917_v25 = vld [vmem:[%s2463_s1 + $0x2f0] sm:$0xff]   ;;  %v1927_v36 = vld [vmem:[%s2463_s1 + $0x2a0] sm:$0xff]   ;;  %v1929_v37 = vld [vmem:[%s2463_s1 + $0x2d8] sm:$0xff]  }
  0x1b   :  { %v1931_v40 = vld [vmem:[%s2463_s1 + $0x298] sm:$0xff]   ;;  %v1934_v43 = vld [vmem:[%s2463_s1 + $0x210] sm:$0xff]   ;;  %v1936_v44 = vld [vmem:[%s2463_s1 + $0x248] sm:$0xff]  }
  0x1c   :  { %1682 = vmatpush3.bf16.msra.mxu0 %v1873_v26  ;;  %v1918_v26 = vld [vmem:[%s2463_s1 + $0x230] sm:$0xff]  }
  0x1d   :  { %1704 = vmatpush3.bf16.msra.mxu1 %v1874_v27  ;;  %1683 = vmatprep.subr.bf16.mxu0 %v1875_v29  ;;  %v1920_v27 = vld [vmem:[%s2463_s1 + $0x268] sm:$0xff]   ;;  %v1935_v46 = vld [vmem:[%s2463_s1 + $0x290] sm:$0xff]  }
  0x1e   :  { %1705 = vmatprep.subr.bf16.mxu1 %v1876_v30  ;;  %v1921_v29 = vld [vmem:[%s2463_s1 + $0x2e8] sm:$0xff]  }
  0x1f   :  { %v1922_v30 = vld [vmem:[%s2463_s1 + $0x228] sm:$0xff]  }
  0x20   :  { %1684 = vmatpush3.bf16.msra.mxu0 %v1877_v31  ;;  %v1924_v31 = vld [vmem:[%s2463_s1 + $0x260] sm:$0xff]  }
  0x21   :  { %1706 = vmatpush3.bf16.msra.mxu1 %v1878_v32  ;;  %1713 = vmatprep.subr.bf16.mxu0 %v1880_v35  ;;  %v1923_v32 = vld [vmem:[%s2463_s1 + $0x2a8] sm:$0xff]   ;;  %v1928_v35 = vld [vmem:[%s2463_s1 + $0x258] sm:$0xff]  }
  0x22   :  { %1735 = vmatprep.subr.bf16.mxu1 %v1881_v38  ;;  %v1930_v38 = vld [vmem:[%s2463_s1 + $0x218] sm:$0xff]  }
  0x23   :  { %1204 = vmatmul.mubr.bf16.vlgmr.msra.gmra.mxu0 %v312_v45  ;;  %v23_v45 = vld [vmem:[%s2462_s0 + $0x8] sm:$0xff] }
  0x24   :  { %1714 = vmatpush3.bf16.msra.mxu0 %v1882_v48  ;;  %1244 = vmatmul.mubr.bf16.vlgmr.msra.gmra.mxu1 %v334_v50  ;;  %v345_v47 = vrot.slane %v23_v45, %v2138_v41  ;;  %v338_v48 = vcombine.high %v23_v45, %v23_v45  ;;  %v1938_v50 = vld [vmem:[%s2463_s1 + $0x208] sm:$0xff]  }
  0x25   :  { %1715 = vmatprep.subr.bf16.mxu0 %v1884_v51  ;;  %1736 = vmatpush3.bf16.msra.mxu1 %v1883_v53  ;;  %v1940_v53 = vld [vmem:[%s2463_s1 + $0x240] sm:$0xff]  }
  0x26   :  { %1283 = vmatprep.mubr.bf16.mxu0 %v333_v49  ;;  %1737 = vmatprep.subr.bf16.mxu1 %v1885_v54  ;;  %v1937_v49 = vld [vmem:[%s2463_s1 + $0x2c8] sm:$0xff]   ;;  %v353_v51 = vcombine.high %v345_v47, %v345_v47  ;;  %v2327_v52 = vrot.slane %v338_v48, %v2138_v41 }
  0x27   :  { %1323 = vmatprep.mubr.bf16.mxu1 %v337_v55  ;;  %v1939_v54 = vld [vmem:[%s2463_s1 + $0x288] sm:$0xff]  }
  0x28   :  { %1716 = vmatpush3.bf16.msra.mxu0 %v1886_v56  ;;  %v375_v55 = vrot.slane %v353_v51, %v2138_v41  ;;  %v354_v56 = vcombine.high %v2327_v52, %v2327_v52 }
  0x29   :  { %1717 = vmatprep.subr.bf16.mxu0 %v1888_v57  ;;  %1738 = vmatpush3.bf16.msra.mxu1 %v1887_v58  ;;  %v1941_v57 = vld [vmem:[%s2463_s1 + $0x2c0] sm:$0xff]  }
  0x2a   :  { %1739 = vmatprep.subr.bf16.mxu1 %v1889_v59  ;;  %v1942_v58 = vld [vmem:[%s2463_s1 + $0x200] sm:$0xff]   ;;  %v385_v59 = vcombine.high %v375_v55, %v375_v55 }
  0x2c   :  { %1718 = vmatpush3.bf16.msra.mxu0 %v1890_v60  ;;  %v361_v60 = vrot.slane %v345_v47, %v2138_v41 }
  0x2d   :  { %1719 = vmatprep.subr.bf16.mxu0 %v1892_v61  ;;  %1740 = vmatpush3.bf16.msra.mxu1 %v1891_v62  ;;  %v1944_v61 = vld [vmem:[%s2463_s1 + $0x378] sm:$0xff]   ;;  %v1943_v62 = vld [vmem:[%s2463_s1 + $0x280] sm:$0xff]  }
  0x2e   :  { %1741 = vmatprep.subr.bf16.mxu1 %v1893_v63  ;;  %v382_v63 = vrot.slane %v354_v56, %v2138_v41 }
  0x30   :  { %1720 = vmatpush3.bf16.msra.mxu0 %v1894_v0  ;;  %v1945_v0 = vld [vmem:[%s2463_s1 + $0x3f8] sm:$0xff]  }
  0x31   :  { %1721 = vmatprep.subr.bf16.mxu0 %v1896_v1  ;;  %1742 = vmatpush3.bf16.msra.mxu1 %v1895_v2  ;;  %v1946_v1 = vld [vmem:[%s2463_s1 + $0x338] sm:$0xff]   ;;  %v383_v2 = vcombine.high %v361_v60, %v361_v60 }
  0x32   :  { %1743 = vmatprep.subr.bf16.mxu1 %v1897_v3  ;;  %v1948_v3 = vld [vmem:[%s2463_s1 + $0x370] sm:$0xff]  }
  0x34   :  { %1722 = vmatpush3.bf16.msra.mxu0 %v1898_v4  ;;  %v1947_v4 = vld [vmem:[%s2463_s1 + $0x3b8] sm:$0xff]  }
  0x35   :  { %1723 = vmatprep.subr.bf16.mxu0 %v1900_v5  ;;  %1744 = vmatpush3.bf16.msra.mxu1 %v1899_v6  ;;  %v386_v5 = vcombine.high %v382_v63, %v382_v63  ;;  %v1949_v6 = vld [vmem:[%s2463_s1 + $0x3f0] sm:$0xff]  }
  0x36   :  { %1745 = vmatprep.subr.bf16.mxu1 %v1901_v7  ;;  %v1950_v7 = vld [vmem:[%s2463_s1 + $0x330] sm:$0xff]  }
  0x38   :  { %1724 = vmatpush3.bf16.msra.mxu0 %v1902_v8  ;;  %v1952_v8 = vld [vmem:[%s2463_s1 + $0x368] sm:$0xff]  }
  0x39   :  { %1725 = vmatprep.subr.bf16.mxu0 %v1904_v9  ;;  %1746 = vmatpush3.bf16.msra.mxu1 %v1903_v10  ;;  %v1951_v9 = vld [vmem:[%s2463_s1 + $0x3b0] sm:$0xff]   ;;  %v1953_v10 = vld [vmem:[%s2463_s1 + $0x3e8] sm:$0xff]  }
  0x3a   :  { %1747 = vmatprep.subr.bf16.mxu1 %v1905_v11  ;;  %v1954_v11 = vld [vmem:[%s2463_s1 + $0x328] sm:$0xff]  }
  0x3c   :  { %1726 = vmatpush3.bf16.msra.mxu0 %v1906_v12  ;;  %v1956_v12 = vld [vmem:[%s2463_s1 + $0x360] sm:$0xff]  }
  0x3d   :  { %1727 = vmatprep.subr.bf16.mxu0 %v1908_v13  ;;  %1748 = vmatpush3.bf16.msra.mxu1 %v1907_v14  ;;  %v1955_v13 = vld [vmem:[%s2463_s1 + $0x3a8] sm:$0xff]   ;;  %v1957_v14 = vld [vmem:[%s2463_s1 + $0x3e0] sm:$0xff]  }
  0x3e   :  { %1749 = vmatprep.subr.bf16.mxu1 %v1909_v15  ;;  %v1958_v15 = vld [vmem:[%s2463_s1 + $0x320] sm:$0xff]  }
  0x40   :  { %1728 = vmatpush3.bf16.msra.mxu0 %v1910_v16  ;;  %v1960_v16 = vld [vmem:[%s2463_s1 + $0x358] sm:$0xff]  }
  0x41   :  { %1757 = vmatprep.subr.bf16.mxu0 %v1912_v18  ;;  %1750 = vmatpush3.bf16.msra.mxu1 %v1911_v19  ;;  %v1961_v18 = vld [vmem:[%s2463_s1 + $0x3d8] sm:$0xff]  }
  0x42   :  { %1779 = vmatprep.subr.bf16.mxu1 %v1913_v20  ;;  %v1962_v19 = vld [vmem:[%s2463_s1 + $0x318] sm:$0xff]   ;;  %v1964_v20 = vld [vmem:[%s2463_s1 + $0x350] sm:$0xff]  }
  0x43   :  { %1284 = vmatmul.mubr.bf16.vlgmr.msra.gmra.mxu0 %v319_v17  ;;  %v1959_v17 = vld [vmem:[%s2463_s1 + $0x3a0] sm:$0xff]  }
  0x44   :  { %1758 = vmatpush3.bf16.msra.mxu0 %v1914_v21  ;;  %1324 = vmatmul.mubr.bf16.vlgmr.msra.gmra.mxu1 %v335_v22  ;;  %v1963_v21 = vld [vmem:[%s2463_s1 + $0x398] sm:$0xff]   ;;  %v1965_v22 = vld [vmem:[%s2463_s1 + $0x3d0] sm:$0xff]  }
  0x45   :  { %1759 = vmatprep.subr.bf16.mxu0 %v1916_v23  ;;  %1780 = vmatpush3.bf16.msra.mxu1 %v1915_v24  ;;  %v1966_v23 = vld [vmem:[%s2463_s1 + $0x310] sm:$0xff]   ;;  %v1968_v24 = vld [vmem:[%s2463_s1 + $0x348] sm:$0xff]  }
  0x46   :  { %1781 = vmatprep.subr.bf16.mxu1 %v1917_v25  ;;  %1363 = vmatprep.mubr.bf16.mxu0 %v375_v55  ;;  %v1967_v25 = vld [vmem:[%s2463_s1 + $0x390] sm:$0xff]  }
  0x47   :  { %1403 = vmatprep.mubr.bf16.mxu1 %v385_v59 }
  0x48   :  { %1760 = vmatpush3.bf16.msra.mxu0 %v1918_v26 }
  0x49   :  { %1761 = vmatprep.subr.bf16.mxu0 %v1920_v27  ;;  %1782 = vmatpush3.bf16.msra.mxu1 %v1919_v28 }
  0x4a   :  { %1783 = vmatprep.subr.bf16.mxu1 %v1921_v29 }
  0x4c   :  { %1762 = vmatpush3.bf16.msra.mxu0 %v1922_v30 }
  0x4d   :  { %1763 = vmatprep.subr.bf16.mxu0 %v1924_v31  ;;  %1784 = vmatpush3.bf16.msra.mxu1 %v1923_v32 }
  0x4e   :  { %1785 = vmatprep.subr.bf16.mxu1 %v1925_v33 }
  0x50   :  { %1764 = vmatpush3.bf16.msra.mxu0 %v1926_v34 }
  0x51   :  { %1765 = vmatprep.subr.bf16.mxu0 %v1928_v35  ;;  %1786 = vmatpush3.bf16.msra.mxu1 %v1927_v36 }
  0x52   :  { %1787 = vmatprep.subr.bf16.mxu1 %v1929_v37 }
  0x54   :  { %1766 = vmatpush3.bf16.msra.mxu0 %v1930_v38 }
  0x55   :  { %1767 = vmatprep.subr.bf16.mxu0 %v1932_v39  ;;  %1788 = vmatpush3.bf16.msra.mxu1 %v1931_v40 }
  0x56   :  { %1789 = vmatprep.subr.bf16.mxu1 %v1933_v42 }
  0x58   :  { %1768 = vmatpush3.bf16.msra.mxu0 %v1934_v43 }
  0x59   :  { %1769 = vmatprep.subr.bf16.mxu0 %v1936_v44  ;;  %1790 = vmatpush3.bf16.msra.mxu1 %v1935_v46 }
  0x5a   :  { %1791 = vmatprep.subr.bf16.mxu1 %v1937_v49 }
  0x5c   :  { %1770 = vmatpush3.bf16.msra.mxu0 %v1938_v50 }
  0x5d   :  { %1771 = vmatprep.subr.bf16.mxu0 %v1940_v53  ;;  %1792 = vmatpush3.bf16.msra.mxu1 %v1939_v54 }
  0x5e   :  { %1793 = vmatprep.subr.bf16.mxu1 %v1941_v57 }
  0x60   :  { %1772 = vmatpush3.bf16.msra.mxu0 %v1942_v58 }
  0x61   :  { %1801 = vmatprep.subr.bf16.mxu0 %v1944_v61  ;;  %1794 = vmatpush3.bf16.msra.mxu1 %v1943_v62 }
  0x62   :  { %1823 = vmatprep.subr.bf16.mxu1 %v1945_v0 }
  0x63   :  { %1364 = vmatmul.mubr.bf16.vlgmr.msra.gmra.mxu0 %v361_v60 }
  0x64   :  { %1802 = vmatpush3.bf16.msra.mxu0 %v1946_v1  ;;  %1443 = vmatprep.mubr.bf16.mxu0 %v382_v63 }
  0x65   :  { %1404 = vmatmul.mubr.bf16.vlgmr.msra.gmra.mxu1 %v383_v2  ;;  %1803 = vmatprep.subr.bf16.mxu0 %v1948_v3 }
  0x66   :  { %1824 = vmatpush3.bf16.msra.mxu1 %v1947_v4  ;;  %1483 = vmatprep.mubr.bf16.mxu1 %v386_v5 }
  0x67   :  { %1825 = vmatprep.subr.bf16.mxu1 %v1949_v6 }
  0x68   :  { %1804 = vmatpush3.bf16.msra.mxu0 %v1950_v7 }
  0x69   :  { %1805 = vmatprep.subr.bf16.mxu0 %v1952_v8 }
  0x6a   :  { %1826 = vmatpush3.bf16.msra.mxu1 %v1951_v9 }
  0x6b   :  { %1827 = vmatprep.subr.bf16.mxu1 %v1953_v10 }
  0x6c   :  { %1806 = vmatpush3.bf16.msra.mxu0 %v1954_v11 }
  0x6d   :  { %1807 = vmatprep.subr.bf16.mxu0 %v1956_v12 }
  0x6e   :  { %1828 = vmatpush3.bf16.msra.mxu1 %v1955_v13 }
  0x6f   :  { %1829 = vmatprep.subr.bf16.mxu1 %v1957_v14 }
  0x70   :  { %1808 = vmatpush3.bf16.msra.mxu0 %v1958_v15 }
  0x71   :  { %1809 = vmatprep.subr.bf16.mxu0 %v1960_v16 }
  0x72   :  { %1830 = vmatpush3.bf16.msra.mxu1 %v1959_v17 }
  0x73   :  { %1831 = vmatprep.subr.bf16.mxu1 %v1961_v18 }
  0x74   :  { %1810 = vmatpush3.bf16.msra.mxu0 %v1962_v19 }
  0x75   :  { %1811 = vmatprep.subr.bf16.mxu0 %v1964_v20 }
  0x76   :  { %1832 = vmatpush3.bf16.msra.mxu1 %v1963_v21 }
  0x77   :  { %10 = vsyncpa [#allocation3], 0  ;;  %1833 = vmatprep.subr.bf16.mxu1 %v1965_v22  ;;  %v1969_v26 = vld [vmem:[%s2463_s1 + $0x3c8] sm:$0xff]   ;;  %v1972_v28 = vld [vmem:[%s2463_s1 + $0x340] sm:$0xff]   ;;  %v368_v32 = vrot.slane %v2327_v52, %v2138_v41  ;;  %vm1491_vm0 = vcmask 254976   ;;  %s2002_s0 = smov [#allocation2]  }
  0x78   :  { %1812 = vmatpush3.bf16.msra.mxu0 %v1966_v23  ;;  %v1970_v27 = vld [vmem:[%s2463_s1 + $0x308] sm:$0xff]   ;;  %v1973_v30 = vld [vmem:[%s2463_s1 + $0x3c0] sm:$0xff]   ;;  %s1530_s29 = sshll.u32 %s2002_s0, 4  ;;  %s1531_s29 = int_to_ptr.vmem [resolvable:$true] %s1530_s29 }
  0x79   :  { %1813 = vmatprep.subr.bf16.mxu0 %v1968_v24  ;;  %v1971_v29 = vld [vmem:[%s2463_s1 + $0x388] sm:$0xff]   ;;  %v1974_v31 = vld [vmem:[%s2463_s1 + $0x300] sm:$0xff]   ;;  %v384_v34 = vcombine.high %v368_v32, %v368_v32  ;;  %s1979_s30 = scalar_lea.vmem %s1531_s29, 32  ;;  %p1984_p1 = scmp.lt.s32.totalorder %s1531_s29, %s1531_s29 }
  0x7a   :  { %1834 = vmatpush3.bf16.msra.mxu1 %v1967_v25  ;;  %v1975_v33 = vld [vmem:[%s2463_s1 + $0x380] sm:$0xff]   ;;  %p1980_p0 = scmp.ne.s32.totalorder %s1531_s29, %s1979_s30  ;;  %p1985_p2 = scmp.lt.s32.totalorder %s1979_s30, %s1979_s30 }
  0x7b   :  { %1835 = vmatprep.subr.bf16.mxu1 %v1969_v26  ;;  %v1538_v37 = vld [vmem:[%s2464_s2] ss:$0 sm:$0xff] }
  0x7c   :  { %1814 = vmatpush3.bf16.msra.mxu0 %v1970_v27  ;;  %p1986_p3 = por %p1985_p2, %p1984_p1 }
  0x7d   :  { %1815 = vmatprep.subr.bf16.mxu0 %v1972_v28 }
  0x7e   :  { %1836 = vmatpush3.bf16.msra.mxu1 %v1971_v29  ;;  %p1987_p4 = pnand %p1986_p3, %p1980_p0 }
  0x7f   :  { %1837 = vmatprep.subr.bf16.mxu1 %v1973_v30  ;;  %v1667_v30 = vld [vmem:[%s2465_s3] ss:$0 sm:$0xff] }
  0x80   :  { %1816 = vmatpush3.bf16.msra.mxu0 %v1974_v31 }
  0x82   :  { %1838 = vmatpush3.bf16.msra.mxu1 %v1975_v33 }
  0x83   :  { %1444 = vmatmul.mubr.bf16.vlgmr.msra.gmra.mxu0 %v368_v32  ;;  %v1668_v32 = vld [vmem:[%s2466_s4] ss:$0 sm:$0xff] }
  0x85   :  { %1484 = vmatmul.mubr.bf16.vlgmr.msra.gmra.mxu1 %v384_v34 }
  0xe3   :  { %v1685_v35 = vpop.f32.mrf.mxu0 }
  0xe4   :  { %v1707_v36 = vpop.f32.mrf.mxu1 }
  0xe5   :  { %v1686_v38 = vpop.f32.mrf.mxu0 }
  0xe6   :  { %v1687_v39 = vadd.f32 %v1686_v38, %v1685_v35  ;;  %v1708_v41 = vpop.f32.mrf.mxu1 }
  0xe7   :  { %v1688_v40 = vpop.f32.mrf.mxu0  ;;  %v1709_v43 = vadd.f32 %v1708_v41, %v1707_v36 }
  0xe8   :  { %v1206_v42 = vadd.f32 %v1687_v39, %v1538_v37  ;;  %v1710_v44 = vpop.f32.mrf.mxu1 }
  0xe9   :  { %v1689_v45 = vpop.f32.mrf.mxu0 }
  0xea   :  { %v1246_v46 = vadd.f32 %v1709_v43, %v1206_v42  ;;  %v1711_v47 = vpop.f32.mrf.mxu1 }
 0x103   :  { %v1729_v48 = vpop.f32.mrf.mxu0 }
 0x104   :  { %v1751_v49 = vpop.f32.mrf.mxu1 }
 0x105   :  { %v1730_v50 = vpop.f32.mrf.mxu0 }
 0x106   :  { %v1752_v51 = vpop.f32.mrf.mxu1  ;;  %v1731_v0 = vadd.f32 %v1730_v50, %v1729_v48 }
 0x107   :  { %v1732_v52 = vpop.f32.mrf.mxu0  ;;  %v1753_v2 = vadd.f32 %v1752_v51, %v1751_v49 }
 0x108   :  { %v1754_v53 = vpop.f32.mrf.mxu1  ;;  %v1286_v1 = vadd.f32 %v1731_v0, %v1246_v46 }
 0x109   :  { %v1733_v54 = vpop.f32.mrf.mxu0 }
 0x10a   :  { %v1755_v55 = vpop.f32.mrf.mxu1  ;;  %v1326_v4 = vadd.f32 %v1753_v2, %v1286_v1 }
 0x123   :  { %v1773_v56 = vpop.f32.mrf.mxu0 }
 0x125   :  { %v1795_v57 = vpop.f32.mrf.mxu1  ;;  %v1774_v58 = vpop.f32.mrf.mxu0 }
 0x126   :  { %v1775_v3 = vadd.f32 %v1774_v58, %v1773_v56 }
 0x127   :  { %v1796_v59 = vpop.f32.mrf.mxu1  ;;  %v1776_v60 = vpop.f32.mrf.mxu0 }
 0x128   :  { %v1366_v5 = vadd.f32 %v1775_v3, %v1326_v4  ;;  %v1797_v6 = vadd.f32 %v1796_v59, %v1795_v57 }
 0x129   :  { %v1798_v61 = vpop.f32.mrf.mxu1  ;;  %v1777_v62 = vpop.f32.mrf.mxu0 }
 0x12a   :  { %v1406_v10 = vadd.f32 %v1797_v6, %v1366_v5 }
 0x12b   :  { %v1799_v63 = vpop.f32.mrf.mxu1 }
 0x143   :  { %v1817_v7 = vpop.f32.mrf.mxu0 }
 0x145   :  { %v1839_v8 = vpop.f32.mrf.mxu1  ;;  %v1818_v9 = vpop.f32.mrf.mxu0 }
 0x146   :  { %v1819_v11 = vadd.f32 %v1818_v9, %v1817_v7 }
 0x147   :  { %v1840_v12 = vpop.f32.mrf.mxu1  ;;  %v1820_v13 = vpop.f32.mrf.mxu0 }
 0x148   :  { %v1446_v14 = vadd.f32 %v1819_v11, %v1406_v10  ;;  %v1841_v15 = vadd.f32 %v1840_v12, %v1839_v8 }
 0x149   :  { %v1842_v16 = vpop.f32.mrf.mxu1  ;;  %v1821_v17 = vpop.f32.mrf.mxu0 }
 0x14a   :  { %v1486_v18 = vadd.f32 %v1841_v15, %v1446_v14 }
 0x14b   :  { %v1843_v19 = vpop.f32.mrf.mxu1 }
 0x14c   :  { %v1492_v20 = vsel %vm1491_vm0, %v1486_v18, 0.0 }
 0x14d   :  { %1493 = vadd.xlane.f32.xlu0 %v1492_v20 }
 0x1d6   :  { %v1494_v21 = vpop.xlane.xlu0 %1493 }
 0x1d7   :  { %v1496_v22 = vmul.f32 0.03125, %v1494_v21 }
 0x1d9   :  { %v1497_v23 = vsub.f32 %v1486_v18, %v1496_v22 }
 0x1db   :  { %v1498_v24 = vmul.f32 %v1497_v23, %v1497_v23 }
 0x1dd   :  { %v1499_v25 = vsel %vm1491_vm0, %v1498_v24, 0.0 }
 0x1de   :  { %1500 = vadd.xlane.f32.xlu0 %v1499_v25 }
 0x267   :  { %v1501_v26 = vpop.xlane.xlu0 %1500 }
 0x268   :  { %v1502_v27 = vmul.f32 0.03125, %v1501_v26 }
 0x26a   :  { %v1503_v28 = vadd.f32 1e-05, %v1502_v27 }
 0x26c   :  { %1977 = vrsqrt.f32 %v1503_v28 }
 0x279   :  { %v1978_v29 = vpop.eup %1977 }
 0x27a   :  { %v1505_v31 = vmul.f32 %v1978_v29, %v1497_v23 }
 0x27c   :  { %v1513_v33 = vmul.f32 %v1667_v30, %v1505_v31 }
 0x27e   :  { %v1521_v34 = vadd.f32 %v1668_v32, %v1513_v33 }
 0x280   :  { %v1522_v35 = vmax.f32 %v1521_v34, 0.0 }
 0x282   :  { %1523 = vst.msk [vmem:[#allocation2] sm:$0x3] %vm1491_vm0, %v1522_v35 }
 0x283   :  { %1990 = shalt.err (!%p1987_p4)
}
 0x284   :  { %1533 = dma.vmem_to_hbm [thread:$0]  %s1531_s29, 32, %s2467_s5, [#allocation3]  }
 0x285   :  { %1999 = dma.done.wait [#allocation3], 32  }
 0x286   :  { %2000 = vsyncadd [#allocation3], 4294967264 }
 0x287   :  { %1537 = vsyncpa [#allocation3], 1 }

</bundles_post_ra>
